<compile_context>
chip_gen: v7x
topology: tpu7x:2x2x1
jax: 0.10.0
libtpu: 0.0.40
codegen_flags: <defaults>
</compile_context>

<pallas_src>
import functools

import jax
import jax.numpy as jnp
import numpy as np
from jax.experimental import pallas as pl
from jax.experimental.pallas import tpu as pltpu


def _asl_partial_kernel(logits_ref, tgt_ref, conf_ref, conf_tgt_ref,
                        nll_out_ref, cnt_out_ref, conf_out_ref, *,
                        pad_idx, n_rows):
    """Per-row-tile partials of ASLTranslationLoss.

    logits_ref:   (TN, V)     native dtype (bf16/f32) -> cast to f32 in-register
    tgt_ref:      (TN, 1)     int32 targets
    conf_ref:     (1, C)      confidence (flattened)
    conf_tgt_ref: (1, C)      confidence target (flattened)
    nll_out_ref:  (1, 8, 128) f32  sum of per-token NLL over valid rows of tile
    cnt_out_ref:  (1, 8, 128) f32  count of valid (non-pad, in-range) rows
    conf_out_ref: (1, 8, 128) f32  MSE(confidence, confidence_target)
    """
    i = pl.program_id(0)
    x = logits_ref[...].astype(jnp.float32)                    # (TN, V)
    tgt = tgt_ref[...]                                         # (TN, 1)
    tn, v = x.shape

    # Numerically stable log-softmax pieces with the target gather fused into
    # the same (x - m) pass (no f32 one-hot, no extra full-tile multiply).
    m = jnp.max(x, axis=1, keepdims=True)                      # (TN, 1)
    s = x - m                                                  # (TN, V)
    sum_p = jnp.sum(jnp.exp(s), axis=1, keepdims=True)         # (TN, 1)
    col = jax.lax.broadcasted_iota(jnp.int32, (tn, v), 1)
    s_t = jnp.sum(jnp.where(col == tgt, s, 0.0), axis=1, keepdims=True)
    nll = jnp.log(sum_p) - s_t                                 # (TN, 1)
    # NOTE: out-of-range targets (>= V or < 0) silently act like a zero gather
    # instead of raising like PyTorch.

    # Mask pad tokens and the padded tail rows of the last tile (their data is
    # undefined); jnp.where keeps NaN/Inf from masked rows out of the sums.
    row = jax.lax.broadcasted_iota(jnp.int32, (tn, 1), 0) + i * tn
    valid = jnp.logical_and(row < n_rows, tgt != pad_idx)      # (TN, 1) bool
    sum_nll = jnp.sum(jnp.where(valid, nll, 0.0))
    n_valid = jnp.sum(valid.astype(jnp.float32))

    # Tiny confidence MSE, recomputed redundantly per tile (race-free under a
    # "parallel" grid axis; C is a handful of elements so the cost is noise).
    d = (conf_ref[...].astype(jnp.float32)
         - conf_tgt_ref[...].astype(jnp.float32))              # (1, C)
    conf_mse = jnp.sum(d * d) / d.size

    nll_out_ref[...] = jnp.full(nll_out_ref.shape, sum_nll, jnp.float32)
    cnt_out_ref[...] = jnp.full(cnt_out_ref.shape, n_valid, jnp.float32)
    conf_out_ref[...] = jnp.full(conf_out_ref.shape, conf_mse, jnp.float32)


def _pick_tile_n(n_rows, vocab, itemsize):
    """Row-tile size: ~1/32 of physical VMEM per streamed logits buffer, which
    leaves headroom for double-buffering and the (TN, V) f32 temporaries under
    the default scoped-VMEM limit on every generation (incl. v7x's 64 MiB)."""
    try:
        phys_vmem = int(pltpu.get_tpu_info().vmem_capacity_bytes)
    except Exception:
        phys_vmem = 64 * 1024 * 1024            # v7x floor; conservative
    per_buf = max(2 * 1024 * 1024, phys_vmem // 32)
    rows = per_buf // max(vocab * itemsize, 1)
    rows = (int(rows) // 16) * 16               # sublane/bf16-packing friendly
    rows = max(16, min(rows, 1024))
    if rows >= n_rows:
        return n_rows                            # single tile: full dim is legal
    return rows


@functools.partial(jax.jit, static_argnames=("pad_idx", "tile_n"))
def _asl_loss_impl(pred, target, confidence, confidence_target, pad_idx, tile_n):
    v = pred.shape[-1]
    logits = pred.reshape(-1, v)                          # NATIVE dtype, no upcast
    n = logits.shape[0]
    tgt = target.reshape(n, 1).astype(jnp.int32)
    conf = confidence.reshape(1, -1)
    conf_t = confidence_target.reshape(1, -1)
    c = conf.shape[1]

    g = pl.cdiv(n, tile_n)
    part_shape = jax.ShapeDtypeStruct((g, 8, 128), jnp.float32)
    part_spec = pl.BlockSpec((1, 8, 128), lambda i: (i, 0, 0))

    nll_p, cnt_p, conf_p = pl.pallas_call(
        functools.partial(_asl_partial_kernel, pad_idx=pad_idx, n_rows=n),
        out_shape=(part_shape, part_shape, part_shape),
        grid=(g,),
        in_specs=[
            pl.BlockSpec((tile_n, v), lambda i: (i, 0)),   # logits row tile
            pl.BlockSpec((tile_n, 1), lambda i: (i, 0)),   # targets row tile
            pl.BlockSpec((1, c), lambda i: (0, 0)),        # confidence (replicated)
            pl.BlockSpec((1, c), lambda i: (0, 0)),        # confidence target
        ],
        out_specs=(part_spec, part_spec, part_spec),
        compiler_params=pltpu.CompilerParams(
            dimension_semantics=("parallel",)),            # megacore-shardable
    )(logits, tgt, conf, conf_t)

    # Tiny cross-tile combine (few elements) in plain JAX so the grid axis can
    # stay fully parallel. Division by zero (all tokens == pad_idx) yields NaN,
    # matching PyTorch's CrossEntropyLoss behavior in that case.
    seq_loss = jnp.sum(nll_p[:, 0, 0]) / jnp.sum(cnt_p[:, 0, 0])
    return seq_loss + 0.1 * conf_p[0, 0, 0]


def asl_translation_loss(pred, target, confidence, confidence_target, pad_idx=0):
    """pred: (B, T, V) logits in native dtype (bf16/f32), target: (B, T) ints,
    confidence / confidence_target: matching shapes (flattened for the MSE)."""
    v = pred.shape[-1]
    n = int(np.prod(pred.shape[:-1]))
    tile_n = _pick_tile_n(n, v, jnp.dtype(pred.dtype).itemsize)
    return _asl_loss_impl(pred, target, confidence, confidence_target,
                          pad_idx=pad_idx, tile_n=tile_n)


def reference_forward(pred, target, confidence, confidence_target, pad_idx=0):
    """Pure-JAX reference mirroring the PyTorch forward."""
    v = pred.shape[-1]
    logits = pred.reshape(-1, v).astype(jnp.float32)
    tgt = target.reshape(-1)
    lse = jax.scipy.special.logsumexp(logits, axis=-1)
    x_t = jnp.take_along_axis(logits, tgt[:, None], axis=-1)[:, 0]
    nll = lse - x_t
    valid = (tgt != pad_idx).astype(jnp.float32)
    seq_loss = jnp.sum(nll * valid) / jnp.sum(valid)
    conf_loss = jnp.mean((confidence.astype(jnp.float32)
                          - confidence_target.astype(jnp.float32)) ** 2)
    return seq_loss + 0.1 * conf_loss


if __name__ == "__main__":
    # Small shapes consistent with the module: batch=2, seq=8, vocab=32,
    # one confidence scalar per batch element. Logits kept in bf16 to exercise
    # the native-dtype streaming path.
    B, T, V = 2, 8, 32
    PAD_IDX = 0

    key = jax.random.PRNGKey(0)
    k1, k2, k3, k4 = jax.random.split(key, 4)

    pred = jax.random.normal(k1, (B, T, V), dtype=jnp.float32).astype(jnp.bfloat16)
    target = jax.random.randint(k2, (B, T), 0, V)
    # force some pad tokens (exercise ignore_index) and guarantee valid tokens
    target = target.at[:, -2:].set(PAD_IDX)
    target = target.at[:, 0].set(jnp.maximum(target[:, 0], 1))
    confidence = jax.random.uniform(k3, (B,), dtype=jnp.float32)
    confidence_target = jax.random.uniform(k4, (B,), dtype=jnp.float32)

    out = asl_translation_loss(pred, target, confidence, confidence_target,
                               pad_idx=PAD_IDX)
    out = jax.block_until_ready(out)
    assert out.shape == (), out.shape

    ref = jax.block_until_ready(
        reference_forward(pred, target, confidence, confidence_target,
                          pad_idx=PAD_IDX))
    np.testing.assert_allclose(np.asarray(out), np.asarray(ref),
                               rtol=1e-4, atol=1e-5)

    print("KERNEL_OK")
</pallas_src>

<mosaic_0001>
module attributes {stable_mosaic.version = 11 : i64} {
  func.func @_asl_partial_kernel(%arg0: i32, %arg1: memref<16x32xbf16, #tpu.memory_space<vmem>>, %arg2: memref<16x1xi32, #tpu.memory_space<vmem>>, %arg3: memref<1x2xf32, #tpu.memory_space<vmem>>, %arg4: memref<1x2xf32, #tpu.memory_space<vmem>>, %arg5: memref<1x8x128xf32, #tpu.memory_space<vmem>>, %arg6: memref<1x8x128xf32, #tpu.memory_space<vmem>>, %arg7: memref<1x8x128xf32, #tpu.memory_space<vmem>>) attributes {dimension_semantics = [#tpu.dimension_semantics<parallel>], iteration_bounds = array<i64: 1>, scalar_prefetch = 0 : i64, scratch_operands = 0 : i64, tpu.core_type = #tpu.core_type<tc>, window_params = [{transform_indices = @transform_0, window_bounds = array<i64: 16, 32>}, {transform_indices = @transform_1, window_bounds = array<i64: 16, 1>}, {pipeline_mode = #tpu.pipeline_mode<synchronous>, transform_indices = @transform_2, window_bounds = array<i64: 1, 2>}, {pipeline_mode = #tpu.pipeline_mode<synchronous>, transform_indices = @transform_3, window_bounds = array<i64: 1, 2>}, {transform_indices = @transform_4, window_bounds = array<i64: 1, 8, 128>}, {transform_indices = @transform_5, window_bounds = array<i64: 1, 8, 128>}, {transform_indices = @transform_6, window_bounds = array<i64: 1, 8, 128>}]} {
    %c0 = arith.constant 0 : index
    %c0_0 = arith.constant 0 : index
    %0 = vector.load %arg1[%c0, %c0_0] : memref<16x32xbf16, #tpu.memory_space<vmem>>, vector<16x32xbf16>
    %1 = arith.extf %0 : vector<16x32xbf16> to vector<16x32xf32>
    %c0_1 = arith.constant 0 : index
    %c0_2 = arith.constant 0 : index
    %2 = vector.load %arg2[%c0_1, %c0_2] : memref<16x1xi32, #tpu.memory_space<vmem>>, vector<16x1xi32>
    %cst = arith.constant dense<0xFF800000> : vector<16xf32>
    %3 = vector.multi_reduction <maximumf>, %1, %cst [1] : vector<16x32xf32> to vector<16xf32>
    %4 = vector.shape_cast %3 : vector<16xf32> to vector<16x1xf32>
    %5 = vector.broadcast %4 : vector<16x1xf32> to vector<16x32xf32>
    %6 = arith.subf %1, %5 : vector<16x32xf32>
    %7 = math.exp %6 : vector<16x32xf32>
    %cst_3 = arith.constant dense<0.000000e+00> : vector<16xf32>
    %8 = vector.multi_reduction <add>, %7, %cst_3 [1] : vector<16x32xf32> to vector<16xf32>
    %9 = vector.shape_cast %8 : vector<16xf32> to vector<16x1xf32>
    %10 = tpu.iota {dimensions = array<i32: 1>} : vector<16x32xi32>
    %11 = vector.broadcast %2 : vector<16x1xi32> to vector<16x32xi32>
    %12 = arith.cmpi eq, %10, %11 : vector<16x32xi32>
    %cst_4 = arith.constant 0.000000e+00 : f32
    %13 = vector.broadcast %cst_4 : f32 to vector<16x32xf32>
    %14 = arith.select %12, %6, %13 : vector<16x32xi1>, vector<16x32xf32>
    %cst_5 = arith.constant dense<0.000000e+00> : vector<16xf32>
    %15 = vector.multi_reduction <add>, %14, %cst_5 [1] : vector<16x32xf32> to vector<16xf32>
    %16 = vector.shape_cast %15 : vector<16xf32> to vector<16x1xf32>
    %17 = math.log %9 : vector<16x1xf32>
    %18 = arith.subf %17, %16 : vector<16x1xf32>
    %19 = tpu.iota {dimensions = array<i32: 0>} : vector<16x1xi32>
    %c16_i32 = arith.constant 16 : i32
    %20 = arith.muli %arg0, %c16_i32 : i32
    %21 = vector.broadcast %20 : i32 to vector<16x1xi32>
    %22 = arith.addi %19, %21 : vector<16x1xi32>
    %c16_i32_6 = arith.constant 16 : i32
    %23 = vector.broadcast %c16_i32_6 : i32 to vector<16x1xi32>
    %24 = arith.cmpi slt, %22, %23 : vector<16x1xi32>
    %c0_i32 = arith.constant 0 : i32
    %25 = vector.broadcast %c0_i32 : i32 to vector<16x1xi32>
    %26 = arith.cmpi ne, %2, %25 : vector<16x1xi32>
    %27 = arith.andi %24, %26 : vector<16x1xi1>
    %cst_7 = arith.constant 0.000000e+00 : f32
    %28 = vector.broadcast %cst_7 : f32 to vector<16x1xf32>
    %29 = arith.select %27, %18, %28 : vector<16x1xi1>, vector<16x1xf32>
    %30 = vector.shape_cast %29 : vector<16x1xf32> to vector<1x16x1xf32>
    %cst_8 = arith.constant dense<0.000000e+00> : vector<1xf32>
    %31 = vector.multi_reduction <add>, %30, %cst_8 [1, 2] : vector<1x16x1xf32> to vector<1xf32>
    %32 = vector.shape_cast %31 : vector<1xf32> to vector<1x1x1xf32>
    %33 = vector.extract %32[0, 0, 0] : f32 from vector<1x1x1xf32>
    %34 = arith.extui %27 : vector<16x1xi1> to vector<16x1xi32>
    %35 = arith.sitofp %34 : vector<16x1xi32> to vector<16x1xf32>
    %36 = vector.shape_cast %35 : vector<16x1xf32> to vector<1x16x1xf32>
    %cst_9 = arith.constant dense<0.000000e+00> : vector<1xf32>
    %37 = vector.multi_reduction <add>, %36, %cst_9 [1, 2] : vector<1x16x1xf32> to vector<1xf32>
    %38 = vector.shape_cast %37 : vector<1xf32> to vector<1x1x1xf32>
    %39 = vector.extract %38[0, 0, 0] : f32 from vector<1x1x1xf32>
    %c0_10 = arith.constant 0 : index
    %c0_11 = arith.constant 0 : index
    %40 = vector.load %arg3[%c0_10, %c0_11] : memref<1x2xf32, #tpu.memory_space<vmem>>, vector<1x2xf32>
    %c0_12 = arith.constant 0 : index
    %c0_13 = arith.constant 0 : index
    %41 = vector.load %arg4[%c0_12, %c0_13] : memref<1x2xf32, #tpu.memory_space<vmem>>, vector<1x2xf32>
    %42 = arith.subf %40, %41 : vector<1x2xf32>
    %43 = arith.mulf %42, %42 : vector<1x2xf32>
    %44 = vector.shape_cast %43 : vector<1x2xf32> to vector<1x1x2xf32>
    %cst_14 = arith.constant dense<0.000000e+00> : vector<1xf32>
    %45 = vector.multi_reduction <add>, %44, %cst_14 [1, 2] : vector<1x1x2xf32> to vector<1xf32>
    %46 = vector.shape_cast %45 : vector<1xf32> to vector<1x1x1xf32>
    %47 = vector.extract %46[0, 0, 0] : f32 from vector<1x1x1xf32>
    %cst_15 = arith.constant 2.000000e+00 : f32
    %48 = arith.divf %47, %cst_15 : f32
    %49 = vector.broadcast %33 : f32 to vector<1x8x128xf32>
    %c0_16 = arith.constant 0 : index
    %c0_17 = arith.constant 0 : index
    %c0_18 = arith.constant 0 : index
    %50 = vector.load %arg5[%c0_16, %c0_17, %c0_18] : memref<1x8x128xf32, #tpu.memory_space<vmem>>, vector<1x8x128xf32>
    tpu.vector_store %arg5[%c0_16, %c0_17, %c0_18], %49 {strides = array<i32>} : memref<1x8x128xf32, #tpu.memory_space<vmem>>, vector<1x8x128xf32>,
    %51 = vector.broadcast %39 : f32 to vector<1x8x128xf32>
    %c0_19 = arith.constant 0 : index
    %c0_20 = arith.constant 0 : index
    %c0_21 = arith.constant 0 : index
    %52 = vector.load %arg6[%c0_19, %c0_20, %c0_21] : memref<1x8x128xf32, #tpu.memory_space<vmem>>, vector<1x8x128xf32>
    tpu.vector_store %arg6[%c0_19, %c0_20, %c0_21], %51 {strides = array<i32>} : memref<1x8x128xf32, #tpu.memory_space<vmem>>, vector<1x8x128xf32>,
    %53 = vector.broadcast %48 : f32 to vector<1x8x128xf32>
    %c0_22 = arith.constant 0 : index
    %c0_23 = arith.constant 0 : index
    %c0_24 = arith.constant 0 : index
    %54 = vector.load %arg7[%c0_22, %c0_23, %c0_24] : memref<1x8x128xf32, #tpu.memory_space<vmem>>, vector<1x8x128xf32>
    tpu.vector_store %arg7[%c0_22, %c0_23, %c0_24], %53 {strides = array<i32>} : memref<1x8x128xf32, #tpu.memory_space<vmem>>, vector<1x8x128xf32>,
    return
  }
  func.func @transform_0(%arg0: i32) -> (i32, i32) {
    %c0_i32 = arith.constant 0 : i32
    %c0_i32_0 = arith.constant 0 : i32
    return %arg0, %c0_i32 : i32, i32
  }
  func.func @transform_1(%arg0: i32) -> (i32, i32) {
    %c0_i32 = arith.constant 0 : i32
    %c0_i32_0 = arith.constant 0 : i32
    return %arg0, %c0_i32 : i32, i32
  }
  func.func @transform_2(%arg0: i32) -> (i32, i32) {
    %c0_i32 = arith.constant 0 : i32
    %c0_i32_0 = arith.constant 0 : i32
    %c0_i32_1 = arith.constant 0 : i32
    return %c0_i32, %c0_i32_0 : i32, i32
  }
  func.func @transform_3(%arg0: i32) -> (i32, i32) {
    %c0_i32 = arith.constant 0 : i32
    %c0_i32_0 = arith.constant 0 : i32
    %c0_i32_1 = arith.constant 0 : i32
    return %c0_i32, %c0_i32_0 : i32, i32
  }
  func.func @transform_4(%arg0: i32) -> (i32, i32, i32) {
    %c0_i32 = arith.constant 0 : i32
    %c0_i32_0 = arith.constant 0 : i32
    %c0_i32_1 = arith.constant 0 : i32
    return %arg0, %c0_i32, %c0_i32_0 : i32, i32, i32
  }
  func.func @transform_5(%arg0: i32) -> (i32, i32, i32) {
    %c0_i32 = arith.constant 0 : i32
    %c0_i32_0 = arith.constant 0 : i32
    %c0_i32_1 = arith.constant 0 : i32
    return %arg0, %c0_i32, %c0_i32_0 : i32, i32, i32
  }
  func.func @transform_6(%arg0: i32) -> (i32, i32, i32) {
    %c0_i32 = arith.constant 0 : i32
    %c0_i32_0 = arith.constant 0 : i32
    %c0_i32_1 = arith.constant 0 : i32
    return %arg0, %c0_i32, %c0_i32_0 : i32, i32, i32
  }
}

</mosaic_0001>

<bundles_post_ra>
// kernel: _asl_loss_impl.1
= control target key start
LH: loop header
LB: loop body
LE: loop exit
PB: predicated region body
PF: predicated region fallthrough
CT: control target
= control target key end

     0   :  { %vm26_vm0 = vcmask 261120   ;;  %v173_v1 = vmov 0   ;;  %v45_v13 = vlaneseq  ;;  %v174_v26 = vmov 0.0   ;;  %s254_s0 = inlined_call_operand.vmem [shape: bf16[16,32], index: 0, kind: input, shape index: {}]   ;;  %s255_s1 = inlined_call_operand.vmem [shape: s32[16,1], index: 1, kind: input, shape index: {}]   ;;  %s256_s2 = inlined_call_operand.vmem [shape: f32[1,2], index: 2, kind: input, shape index: {}]   ;;  %s257_s3 = inlined_call_operand.vmem [shape: f32[1,2], index: 3, kind: input, shape index: {}]   ;;  %s258_s4 = inlined_call_operand.vmem [shape: f32[1,8,128], index: 4, kind: output, shape index: {0}]   ;;  %s259_s5 = inlined_call_operand.vmem [shape: f32[1,8,128], index: 5, kind: output, shape index: {1}]   ;;  %s260_s6 = inlined_call_operand.vmem [shape: f32[1,8,128], index: 6, kind: output, shape index: {2}]  }
   0x1   :  { %v152_v0 = vld [vmem:[%s254_s0] sm:$0xff]   ;;  %163 = vset.pattern.permute.xlu1 %v173_v1  ;;  %164 = vset.pattern.permute.xlu0 %v173_v1  ;;  %v25_v5 = vld [vmem:[%s255_s1 + $0x8] sm:$0xff]  ;;  %vm84_vm5 = vcmask 7168   ;;  %vm117_vm6 = vcmask 8192  }
   0x2   :  { %v216_v2 = vld [vmem:[%s255_s1] sm:$0xff]  ;;  %v153_v3 = vunpack.c.l.bf16 %v152_v0  ;;  %v154_v4 = vunpack.c.h.bf16 %v152_v0  ;;  %v46_v16 = vand.u32 127, %v45_v13  ;;  %vm79_vm4 = vcmp.ne.s32.totalorder %v25_v5, 0 }
   0x3   :  { %48 = vperm.xlu1 %163, %v216_v2   ;;  %vm78_vm3 = vcmp.ne.s32.totalorder %v216_v2, 0  ;;  %v150_v28 = vsel %vm79_vm4, 1.0, %v174_v26  ;;  %v113_v38 = vld [vmem:[%s256_s2] sm:$0x1] }
   0x4   :  { %v27_v6 = vsel %vm26_vm0, %v153_v3, -inf  ;;  %v30_v7 = vsel %vm26_vm0, %v154_v4, -inf  ;;  %v149_v27 = vsel %vm78_vm3, 1.0, %v174_v26  ;;  %v102_v30 = vsel %vm84_vm5, %v150_v28, 0.0  ;;  %v114_v39 = vld [vmem:[%s257_s3] sm:$0x1] }
   0x5   :  { %28 = vmax.xlane.f32.xlu0 %v27_v6  ;;  %v101_v29 = vsel %vm84_vm5, %v149_v27, 0.0  ;;  %v115_v43 = vsub.f32 %v113_v38, %v114_v39 }
   0x6   :  { %v103_v31 = vadd.f32 %v102_v30, %v101_v29 }
   0x7   :  { %51 = vperm.xlu1 %163, %v25_v5   ;;  %v116_v49 = vmul.f32 %v115_v43, %v115_v43 }
   0x9   :  { %31 = vmax.xlane.f32.xlu0 %v30_v7  ;;  %v118_v51 = vsel %vm117_vm6, %v116_v49, 0.0 }
  0x82   :  { %v49_v15 = vpop.permute.xlu1 %48 }
  0x83   :  { %vm53_vm1 = vcmp.eq.s32.totalorder %v46_v16, %v49_v15 }
  0x86   :  { %v52_v18 = vpop.permute.xlu1 %51 }
  0x87   :  { %vm54_vm2 = vcmp.eq.s32.totalorder %v46_v16, %v52_v18 }
  0x92   :  { %v29_v8 = vpop.xlane.xlu0 %28 }
  0x93   :  { %v33_v9 = vsub.f32 %v153_v3, %v29_v8 }
  0x95   :  { %v35_v10 = vmul.f32 1.442695, %v33_v9  ;;  %v55_v20 = vsel %vm53_vm1, %v33_v9, 0.0 }
  0x96   :  { %v32_v11 = vpop.xlane.xlu0 %31  ;;  %v57_v22 = vsel %vm26_vm0, %v55_v20, 0.0 }
  0x97   :  { %165 = vpow2.f32 %v35_v10  ;;  %v34_v12 = vsub.f32 %v154_v4, %v32_v11 }
  0x99   :  { %v37_v14 = vmul.f32 1.442695, %v34_v12  ;;  %v56_v24 = vsel %vm54_vm2, %v34_v12, 0.0 }
  0x9a   :  { %v60_v25 = vsel %vm26_vm0, %v56_v24, 0.0 }
  0x9b   :  { %167 = vpow2.f32 %v37_v14 }
  0xa1   :  { %v166_v17 = vpop.eup %165 }
  0xa2   :  { %v39_v19 = vsel %vm26_vm0, %v166_v17, 0.0 }
  0xa3   :  { %40 = vadd.xlane.f32.xlu0 %v39_v19 }
  0xa5   :  { %v168_v21 = vpop.eup %167 }
  0xa6   :  { %v42_v23 = vsel %vm26_vm0, %v168_v21, 0.0 }
  0xa7   :  { %58 = vadd.xlane.f32.xlu0 %v57_v22  ;;  %43 = vadd.xlane.f32.xlu1 %v42_v23 }
  0xab   :  { %61 = vadd.xlane.f32.xlu0 %v60_v25 }
  0xaf   :  { %104 = vadd.xlane.f32.xlu0 %v103_v31 }
 0x130   :  { %v41_v32 = vpop.xlane.xlu0 %40 }
 0x131   :  { %169 = vlog2.f32 %v41_v32 }
 0x134   :  { %v44_v33 = vpop.xlane.xlu1 %43  ;;  %v59_v35 = vpop.xlane.xlu0 %58 }
 0x135   :  { %171 = vlog2.f32 %v44_v33 }
 0x138   :  { %v62_v42 = vpop.xlane.xlu0 %61 }
 0x13b   :  { %v170_v34 = vpop.eup %169 }
 0x13c   :  { %v64_v36 = vmul.f32 0.6931472, %v170_v34  ;;  %v105_v52 = vpop.xlane.xlu0 %104 }
 0x13d   :  { %v106_v53 = vrot.slane %v105_v52, 4 }
 0x13e   :  { %v67_v37 = vsub.f32 %v64_v36, %v59_v35 }
 0x13f   :  { %v172_v40 = vpop.eup %171  ;;  %v107_v54 = vadd.f32 %v106_v53, %v105_v52 }
 0x140   :  { %v66_v41 = vmul.f32 0.6931472, %v172_v40  ;;  %v82_v44 = vsel %vm78_vm3, %v67_v37, 0.0 }
 0x141   :  { %v85_v47 = vsel %vm84_vm5, %v82_v44, 0.0  ;;  %v108_v55 = vrot.slane %v107_v54, 2 }
 0x142   :  { %v68_v45 = vsub.f32 %v66_v41, %v62_v42 }
 0x143   :  { %v109_v60 = vadd.f32 %v108_v55, %v107_v54 }
 0x144   :  { %v83_v46 = vsel %vm79_vm4, %v68_v45, 0.0 }
 0x145   :  { %v86_v48 = vsel %vm84_vm5, %v83_v46, 0.0  ;;  %v110_v1 = vrot.slane %v109_v60, 1 }
 0x146   :  { %v87_v50 = vadd.f32 %v86_v48, %v85_v47 }
 0x147   :  { %v111_v6 = vadd.f32 %v110_v1, %v109_v60 }
 0x148   :  { %88 = vadd.xlane.f32.xlu0 %v87_v50 }
 0x14c   :  { %119 = vadd.xlane.f32.xlu0 %v118_v51 }
 0x1d5   :  { %v89_v56 = vpop.xlane.xlu0 %88 }
 0x1d6   :  { %v90_v57 = vrot.slane %v89_v56, 4 }
 0x1d8   :  { %v91_v58 = vadd.f32 %v90_v57, %v89_v56 }
 0x1d9   :  { %v120_v59 = vpop.xlane.xlu0 %119 }
 0x1da   :  { %v92_v61 = vrot.slane %v91_v58, 2  ;;  %v121_v62 = vrot.slane %v120_v59, 4 }
 0x1dc   :  { %v122_v63 = vadd.f32 %v121_v62, %v120_v59  ;;  %v93_v0 = vadd.f32 %v92_v61, %v91_v58 }
 0x1de   :  { %v123_v2 = vrot.slane %v122_v63, 2  ;;  %v94_v3 = vrot.slane %v93_v0, 1 }
 0x1e0   :  { %v124_v4 = vadd.f32 %v123_v2, %v122_v63  ;;  %v95_v5 = vadd.f32 %v94_v3, %v93_v0 }
 0x1e2   :  { %155 = vpush %v95_v5  ;;  %v125_v7 = vrot.slane %v124_v4, 1 }
 0x1e3   :  { %157 = vpush %v111_v6 }
 0x1e4   :  { %v126_v8 = vadd.f32 %v125_v7, %v124_v4 }
 0x1e6   :  { %159 = vpush %v126_v8 }
 0x213   :  { %s156_s2 = spop %155 }
 0x214   :  { %v131_v9 = vstv %s156_s2  ;;  %s158_s3 = spop %157 }
 0x215   :  { %132 = vst [vmem:[%s258_s4] sm:$0xff] %v131_v9  ;;  %v133_v10 = vstv %s158_s3 }
 0x216   :  { %134 = vst [vmem:[%s259_s5] sm:$0xff] %v133_v10 }
 0x217   :  { %s160_s9 = spop %159 }
 0x218   :  { %s130_s10 = smul.f32 0.5, %s160_s9 }
 0x21a   :  { %v135_v11 = vstv %s130_s10 }
 0x21b   :  { %136 = vst [vmem:[%s260_s6] sm:$0xff] %v135_v11 }

</bundles_post_ra>
